<compile_context>
chip_gen: v7x
topology: tpu7x:2x2x1
jax: 0.10.0
libtpu: 0.0.40
codegen_flags: <defaults>
</compile_context>

<pallas_src>
import jax
import jax.numpy as jnp
from jax.experimental import pallas as pl
from jax.experimental.pallas import tpu as pltpu

BN_EPS = 1e-5  # PyTorch BatchNorm1d default eps


def _round_up(x, m):
    return ((x + m - 1) // m) * m


def _gelu_exact(x):
    # nn.GELU() default = exact erf-based GELU (computed in f32 on the VPU).
    return 0.5 * x * (1.0 + jax.lax.erf(x * (1.0 / jnp.sqrt(2.0).astype(x.dtype))))


def _ranker_kernel(xa_ref, xb_ref,
                   wp_ref, bp_ref,
                   w12_ref, b12_ref,
                   w3_ref, b3_ref,
                   w4_ref,
                   out_ref):
    """One batch tile of the SequenceRanker forward.

    xa_ref / xb_ref : (TM, H) bf16 CLS tokens of sequences a and b.
    wp              : (H, H)   bf16 pooler.dense weight.
    w12             : (H, 256) bf16 fused Linear(H,512)@Linear(512,256) [+BN(256)].
    w3              : (256,128) bf16 Linear(256,128) [+BN(128)].
    bp/b12/b3       : (1, N) f32 biases (folded where applicable).
    w4_ref          : (1, 128) f32 row of the final Linear (bias cancels in a-b).
    out_ref         : (TM, 1) f32 = sigmoid(rank_a - rank_b).
    """
    tm = xa_ref.shape[0]

    # Stack a and b along the sublane axis -> single matmul chain with M = 2*TM.
    x = jnp.concatenate([xa_ref[...], xb_ref[...]], axis=0)          # (2*TM, H) bf16

    # --- ContextPooler: Dropout(p=0) -> Linear(H, H) -> GELU (exact erf) ---
    h = jnp.dot(x, wp_ref[...], preferred_element_type=jnp.float32) + bp_ref[...]
    h = _gelu_exact(h)

    # --- ranker ---
    # Linear(H,512) ∘ Linear(512,256) ∘ BatchNorm1d(256) (all folded) -> ReLU
    h = jnp.dot(h.astype(jnp.bfloat16), w12_ref[...],
                preferred_element_type=jnp.float32) + b12_ref[...]
    h = jnp.maximum(h, 0.0)
    # Linear(256,128) ∘ BatchNorm1d(128) (folded) -> ReLU  (Dropout = eval identity)
    h = jnp.dot(h.astype(jnp.bfloat16), w3_ref[...],
                preferred_element_type=jnp.float32) + b3_ref[...]
    h = jnp.maximum(h, 0.0)

    # Final Linear(128, 1): bias cancels in (rank_a - rank_b); VPU multiply with the
    # weight row + lane (XLU) reduction instead of an N=1 MXU matmul.
    diff = h[:tm, :] - h[tm:, :]                                     # (TM, 128) f32
    logit = jnp.sum(diff * w4_ref[...], axis=-1, keepdims=True)      # (TM, 1)
    out_ref[...] = jax.nn.sigmoid(logit)


def init_params(hidden_size, layer_sizes=(512, 256, 128), key=jax.random.PRNGKey(0)):
    """Raw PyTorch-like parameters (f32), matching the module's __init__ shapes.

    Linear: U(-1/sqrt(fan_in), 1/sqrt(fan_in)) (PyTorch default), weights stored
    (in, out). BatchNorm1d: gamma=1, beta=0, running_mean=0, running_var=1.
    """
    def linear(k, fan_in, fan_out):
        kw, kb = jax.random.split(k)
        bound = 1.0 / jnp.sqrt(fan_in)
        w = jax.random.uniform(kw, (fan_in, fan_out), jnp.float32, -bound, bound)
        b = jax.random.uniform(kb, (1, fan_out), jnp.float32, -bound, bound)
        return w, b

    ks = jax.random.split(key, 5)
    H = hidden_size
    s0, s1, s2 = layer_sizes
    wp, bp = linear(ks[0], H, H)          # pooler.dense
    w1, b1 = linear(ks[1], H, s0)         # Linear(H, 512)
    w2, b2 = linear(ks[2], s0, s1)        # Linear(512, 256)
    w3, b3 = linear(ks[3], s1, s2)        # Linear(256, 128)
    w4, b4 = linear(ks[4], s2, 1)         # Linear(128, 1)

    def bn(n):
        return (jnp.ones((1, n), jnp.float32),    # gamma
                jnp.zeros((1, n), jnp.float32),   # beta
                jnp.zeros((1, n), jnp.float32),   # running_mean
                jnp.ones((1, n), jnp.float32))    # running_var

    g2, be2, m2, v2 = bn(s1)
    g3, be3, m3, v3 = bn(s2)

    return (wp, bp, w1, b1,
            w2, b2, g2, be2, m2, v2,
            w3, b3, g3, be3, m3, v3,
            w4, b4)


def sequence_ranker_forward(hidden_states_a, hidden_states_b, params, *, block_m=256):
    """hidden_states_{a,b}: (B, S, H). Returns sigmoid(rank_a - rank_b).squeeze()."""
    (wp, bp, w1, b1,
     w2, b2, g2, be2, m2, v2,
     w3, b3, g3, be3, m3, v3,
     w4, b4) = params

    B = hidden_states_a.shape[0]
    H = hidden_states_a.shape[-1]

    # CLS-token extraction is glue; cast to bf16 here so the kernel's dominant HBM
    # DMA (the activations) moves half the bytes. Heavy math lives in the kernel.
    cls_a = hidden_states_a[:, 0, :].astype(jnp.bfloat16)
    cls_b = hidden_states_b[:, 0, :].astype(jnp.bfloat16)

    # Batch tiling: TM multiple of 16 (bf16 sublane packing); 256 fills the v6e/v7x
    # MXU once a/b are stacked (M = 2*TM = 512) and is a multiple of 128 for v5e.
    tm = min(block_m, _round_up(B, 16))
    Bp = _round_up(B, tm)
    if Bp != B:
        cls_a = jnp.pad(cls_a, ((0, Bp - B), (0, 0)))
        cls_b = jnp.pad(cls_b, ((0, Bp - B), (0, 0)))

    f32 = jnp.float32
    bf16 = jnp.bfloat16

    # Fold eval-mode BatchNorm into the preceding Linear.
    s2 = g2 * jax.lax.rsqrt(v2 + BN_EPS)
    w2f = w2 * s2
    b2f = (b2 - m2) * s2 + be2
    s3 = g3 * jax.lax.rsqrt(v3 + BN_EPS)
    w3f = w3 * s3
    b3f = (b3 - m3) * s3 + be3
    # Linear(H,512) and Linear(512,256) have no nonlinearity between them -> fuse.
    w12 = w1 @ w2f                 # (H, 256)
    b12 = b1 @ w2f + b2f           # (1, 256)
    # Last layer bias cancels in (rank_a - rank_b); keep only the weight row.
    w4row = w4.T                   # (1, last_layer_size)

    weights = (wp.astype(bf16), bp.astype(f32),
               w12.astype(bf16), b12.astype(f32),
               w3f.astype(bf16), b3f.astype(f32),
               w4row.astype(f32))

    grid = (Bp // tm,)
    x_spec = pl.BlockSpec((tm, H), lambda i: (i, 0))
    w_specs = [pl.BlockSpec(w.shape, lambda i: (0, 0)) for w in weights]

    out = pl.pallas_call(
        _ranker_kernel,
        out_shape=jax.ShapeDtypeStruct((Bp, 1), jnp.float32),
        grid_spec=pltpu.PrefetchScalarGridSpec(
            num_scalar_prefetch=0,
            grid=grid,
            in_specs=[x_spec, x_spec] + w_specs,
            out_specs=pl.BlockSpec((tm, 1), lambda i: (i, 0)),
        ),
        compiler_params=pltpu.CompilerParams(
            dimension_semantics=("parallel",),
            vmem_limit_bytes=32 * 1024 * 1024,
        ),
    )(cls_a, cls_b, *weights)

    return jnp.squeeze(out[:B, :])  # matches torch .squeeze()


def reference_forward(hidden_states_a, hidden_states_b, params):
    """Pure-JAX f32 reference of the same (inference-mode) semantics, unfused."""
    (wp, bp, w1, b1, w2, b2, g2, be2, m2, v2,
     w3, b3, g3, be3, m3, v3, w4, b4) = params

    def mlp(x):
        h = _gelu_exact(x @ wp + bp)
        h = h @ w1 + b1
        h = h @ w2 + b2
        h = (h - m2) / jnp.sqrt(v2 + BN_EPS) * g2 + be2
        h = jnp.maximum(h, 0.0)
        h = h @ w3 + b3
        h = (h - m3) / jnp.sqrt(v3 + BN_EPS) * g3 + be3
        h = jnp.maximum(h, 0.0)
        return h @ w4 + b4

    la = mlp(hidden_states_a[:, 0, :].astype(jnp.float32))
    lb = mlp(hidden_states_b[:, 0, :].astype(jnp.float32))
    return jnp.squeeze(jax.nn.sigmoid(la - lb))


if __name__ == "__main__":
    B, S, H = 2, 8, 32  # small shapes: batch=2, seq=8, pooler_hidden_size=32
    key = jax.random.PRNGKey(0)
    k_a, k_b, k_p = jax.random.split(key, 3)
    hidden_a = jax.random.normal(k_a, (B, S, H), jnp.float32)
    hidden_b = jax.random.normal(k_b, (B, S, H), jnp.float32)

    params = init_params(H, layer_sizes=(512, 256, 128), key=k_p)

    out = jax.jit(sequence_ranker_forward)(hidden_a, hidden_b, params)
    out = jax.block_until_ready(out)

    ref = reference_forward(hidden_a, hidden_b, params)
    assert out.shape == ref.shape == (B,)
    # bf16 matmul operands -> slightly looser tolerance than a pure-f32 comparison.
    assert jnp.allclose(out, ref, atol=2e-2, rtol=2e-2), (out, ref)

    # TODO(synk): training-mode BatchNorm (batch statistics) and active Dropout are
    # not implemented; kernel reproduces eval/inference semantics.
    print("KERNEL_OK")
</pallas_src>

<mosaic_0001>
module attributes {stable_mosaic.version = 11 : i64} {
  func.func @_ranker_kernel(%arg0: i32, %arg1: memref<16x32xbf16, #tpu.memory_space<vmem>>, %arg2: memref<16x32xbf16, #tpu.memory_space<vmem>>, %arg3: memref<32x32xbf16, #tpu.memory_space<vmem>>, %arg4: memref<1x32xf32, #tpu.memory_space<vmem>>, %arg5: memref<32x256xbf16, #tpu.memory_space<vmem>>, %arg6: memref<1x256xf32, #tpu.memory_space<vmem>>, %arg7: memref<256x128xbf16, #tpu.memory_space<vmem>>, %arg8: memref<1x128xf32, #tpu.memory_space<vmem>>, %arg9: memref<1x128xf32, #tpu.memory_space<vmem>>, %arg10: memref<16x1xf32, #tpu.memory_space<vmem>>) attributes {dimension_semantics = [#tpu.dimension_semantics<parallel>], iteration_bounds = array<i64: 1>, scalar_prefetch = 0 : i64, scratch_operands = 0 : i64, tpu.core_type = #tpu.core_type<tc>, window_params = [{transform_indices = @transform_0, window_bounds = array<i64: 16, 32>}, {transform_indices = @transform_1, window_bounds = array<i64: 16, 32>}, {pipeline_mode = #tpu.pipeline_mode<synchronous>, transform_indices = @transform_2, window_bounds = array<i64: 32, 32>}, {pipeline_mode = #tpu.pipeline_mode<synchronous>, transform_indices = @transform_3, window_bounds = array<i64: 1, 32>}, {pipeline_mode = #tpu.pipeline_mode<synchronous>, transform_indices = @transform_4, window_bounds = array<i64: 32, 256>}, {pipeline_mode = #tpu.pipeline_mode<synchronous>, transform_indices = @transform_5, window_bounds = array<i64: 1, 256>}, {pipeline_mode = #tpu.pipeline_mode<synchronous>, transform_indices = @transform_6, window_bounds = array<i64: 256, 128>}, {pipeline_mode = #tpu.pipeline_mode<synchronous>, transform_indices = @transform_7, window_bounds = array<i64: 1, 128>}, {pipeline_mode = #tpu.pipeline_mode<synchronous>, transform_indices = @transform_8, window_bounds = array<i64: 1, 128>}, {transform_indices = @transform_9, window_bounds = array<i64: 16, 1>}]} {
    %c0 = arith.constant 0 : index
    %c0_0 = arith.constant 0 : index
    %0 = vector.load %arg1[%c0, %c0_0] : memref<16x32xbf16, #tpu.memory_space<vmem>>, vector<16x32xbf16>
    %c0_1 = arith.constant 0 : index
    %c0_2 = arith.constant 0 : index
    %1 = vector.load %arg2[%c0_1, %c0_2] : memref<16x32xbf16, #tpu.memory_space<vmem>>, vector<16x32xbf16>
    %2 = tpu.concatenate %0, %1 in 0 : vector<16x32xbf16>, vector<16x32xbf16> -> vector<32x32xbf16>
    %c0_3 = arith.constant 0 : index
    %c0_4 = arith.constant 0 : index
    %3 = vector.load %arg3[%c0_3, %c0_4] : memref<32x32xbf16, #tpu.memory_space<vmem>>, vector<32x32xbf16>
    %cst = arith.constant dense<0.000000e+00> : vector<32x32xf32>
    %4 = tpu.matmul %2, %3, %cst {dimension_numbers = #tpu.dot_dimension_numbers<[1], [0], [0], [1], [0, 0, 1, 1], [], []>} : vector<32x32xbf16>, vector<32x32xbf16>, vector<32x32xf32> -> vector<32x32xf32>
    %c0_5 = arith.constant 0 : index
    %c0_6 = arith.constant 0 : index
    %5 = vector.load %arg4[%c0_5, %c0_6] : memref<1x32xf32, #tpu.memory_space<vmem>>, vector<1x32xf32>
    %6 = vector.broadcast %5 : vector<1x32xf32> to vector<32x32xf32>
    %7 = arith.addf %4, %6 : vector<32x32xf32>
    %cst_7 = arith.constant 5.000000e-01 : f32
    %8 = vector.broadcast %cst_7 : f32 to vector<32x32xf32>
    %9 = arith.mulf %8, %7 : vector<32x32xf32>
    %cst_8 = arith.constant 2.000000e+00 : f32
    %10 = math.sqrt %cst_8 : f32
    %cst_9 = arith.constant 1.000000e+00 : f32
    %11 = arith.divf %cst_9, %10 : f32
    %12 = vector.broadcast %11 : f32 to vector<32x32xf32>
    %13 = arith.mulf %7, %12 : vector<32x32xf32>
    %14 = math.erf %13 : vector<32x32xf32>
    %cst_10 = arith.constant 1.000000e+00 : f32
    %15 = vector.broadcast %cst_10 : f32 to vector<32x32xf32>
    %16 = arith.addf %15, %14 : vector<32x32xf32>
    %17 = arith.mulf %9, %16 : vector<32x32xf32>
    %18 = arith.truncf %17 : vector<32x32xf32> to vector<32x32xbf16>
    %c0_11 = arith.constant 0 : index
    %c0_12 = arith.constant 0 : index
    %19 = vector.load %arg5[%c0_11, %c0_12] : memref<32x256xbf16, #tpu.memory_space<vmem>>, vector<32x256xbf16>
    %cst_13 = arith.constant dense<0.000000e+00> : vector<32x256xf32>
    %20 = tpu.matmul %18, %19, %cst_13 {dimension_numbers = #tpu.dot_dimension_numbers<[1], [0], [0], [1], [0, 0, 1, 1], [], []>} : vector<32x32xbf16>, vector<32x256xbf16>, vector<32x256xf32> -> vector<32x256xf32>
    %c0_14 = arith.constant 0 : index
    %c0_15 = arith.constant 0 : index
    %21 = vector.load %arg6[%c0_14, %c0_15] : memref<1x256xf32, #tpu.memory_space<vmem>>, vector<1x256xf32>
    %22 = vector.broadcast %21 : vector<1x256xf32> to vector<32x256xf32>
    %23 = arith.addf %20, %22 : vector<32x256xf32>
    %cst_16 = arith.constant 0.000000e+00 : f32
    %24 = vector.broadcast %cst_16 : f32 to vector<32x256xf32>
    %25 = arith.maximumf %23, %24 : vector<32x256xf32>
    %26 = arith.truncf %25 : vector<32x256xf32> to vector<32x256xbf16>
    %c0_17 = arith.constant 0 : index
    %c0_18 = arith.constant 0 : index
    %27 = vector.load %arg7[%c0_17, %c0_18] : memref<256x128xbf16, #tpu.memory_space<vmem>>, vector<256x128xbf16>
    %cst_19 = arith.constant dense<0.000000e+00> : vector<32x128xf32>
    %28 = tpu.matmul %26, %27, %cst_19 {dimension_numbers = #tpu.dot_dimension_numbers<[1], [0], [0], [1], [0, 0, 1, 1], [], []>} : vector<32x256xbf16>, vector<256x128xbf16>, vector<32x128xf32> -> vector<32x128xf32>
    %c0_20 = arith.constant 0 : index
    %c0_21 = arith.constant 0 : index
    %29 = vector.load %arg8[%c0_20, %c0_21] : memref<1x128xf32, #tpu.memory_space<vmem>>, vector<1x128xf32>
    %30 = vector.broadcast %29 : vector<1x128xf32> to vector<32x128xf32>
    %31 = arith.addf %28, %30 : vector<32x128xf32>
    %cst_22 = arith.constant 0.000000e+00 : f32
    %32 = vector.broadcast %cst_22 : f32 to vector<32x128xf32>
    %33 = arith.maximumf %31, %32 : vector<32x128xf32>
    %34 = vector.extract_strided_slice %33 {offsets = [0, 0], sizes = [16, 128], strides = [1, 1]} : vector<32x128xf32> to vector<16x128xf32>
    %35 = vector.extract_strided_slice %33 {offsets = [16, 0], sizes = [16, 128], strides = [1, 1]} : vector<32x128xf32> to vector<16x128xf32>
    %36 = arith.subf %34, %35 : vector<16x128xf32>
    %c0_23 = arith.constant 0 : index
    %c0_24 = arith.constant 0 : index
    %37 = vector.load %arg9[%c0_23, %c0_24] : memref<1x128xf32, #tpu.memory_space<vmem>>, vector<1x128xf32>
    %38 = vector.broadcast %37 : vector<1x128xf32> to vector<16x128xf32>
    %39 = arith.mulf %36, %38 : vector<16x128xf32>
    %cst_25 = arith.constant dense<0.000000e+00> : vector<16xf32>
    %40 = vector.multi_reduction <add>, %39, %cst_25 [1] : vector<16x128xf32> to vector<16xf32>
    %41 = vector.shape_cast %40 : vector<16xf32> to vector<16x1xf32>
    %42 = arith.negf %41 : vector<16x1xf32>
    %43 = math.exp %42 : vector<16x1xf32>
    %cst_26 = arith.constant 1.000000e+00 : f32
    %44 = vector.broadcast %cst_26 : f32 to vector<16x1xf32>
    %45 = arith.addf %44, %43 : vector<16x1xf32>
    %46 = arith.divf %44, %45 : vector<16x1xf32>
    %c0_27 = arith.constant 0 : index
    %c0_28 = arith.constant 0 : index
    %47 = vector.load %arg10[%c0_27, %c0_28] : memref<16x1xf32, #tpu.memory_space<vmem>>, vector<16x1xf32>
    tpu.vector_store %arg10[%c0_27, %c0_28], %46 {strides = array<i32>} : memref<16x1xf32, #tpu.memory_space<vmem>>, vector<16x1xf32>,
    return
  }
  func.func @transform_0(%arg0: i32) -> (i32, i32) {
    %c0_i32 = arith.constant 0 : i32
    %c0_i32_0 = arith.constant 0 : i32
    return %arg0, %c0_i32 : i32, i32
  }
  func.func @transform_1(%arg0: i32) -> (i32, i32) {
    %c0_i32 = arith.constant 0 : i32
    %c0_i32_0 = arith.constant 0 : i32
    return %arg0, %c0_i32 : i32, i32
  }
  func.func @transform_2(%arg0: i32) -> (i32, i32) {
    %c0_i32 = arith.constant 0 : i32
    %c0_i32_0 = arith.constant 0 : i32
    %c0_i32_1 = arith.constant 0 : i32
    return %c0_i32, %c0_i32_0 : i32, i32
  }
  func.func @transform_3(%arg0: i32) -> (i32, i32) {
    %c0_i32 = arith.constant 0 : i32
    %c0_i32_0 = arith.constant 0 : i32
    %c0_i32_1 = arith.constant 0 : i32
    return %c0_i32, %c0_i32_0 : i32, i32
  }
  func.func @transform_4(%arg0: i32) -> (i32, i32) {
    %c0_i32 = arith.constant 0 : i32
    %c0_i32_0 = arith.constant 0 : i32
    %c0_i32_1 = arith.constant 0 : i32
    return %c0_i32, %c0_i32_0 : i32, i32
  }
  func.func @transform_5(%arg0: i32) -> (i32, i32) {
    %c0_i32 = arith.constant 0 : i32
    %c0_i32_0 = arith.constant 0 : i32
    %c0_i32_1 = arith.constant 0 : i32
    return %c0_i32, %c0_i32_0 : i32, i32
  }
  func.func @transform_6(%arg0: i32) -> (i32, i32) {
    %c0_i32 = arith.constant 0 : i32
    %c0_i32_0 = arith.constant 0 : i32
    %c0_i32_1 = arith.constant 0 : i32
    return %c0_i32, %c0_i32_0 : i32, i32
  }
  func.func @transform_7(%arg0: i32) -> (i32, i32) {
    %c0_i32 = arith.constant 0 : i32
    %c0_i32_0 = arith.constant 0 : i32
    %c0_i32_1 = arith.constant 0 : i32
    return %c0_i32, %c0_i32_0 : i32, i32
  }
  func.func @transform_8(%arg0: i32) -> (i32, i32) {
    %c0_i32 = arith.constant 0 : i32
    %c0_i32_0 = arith.constant 0 : i32
    %c0_i32_1 = arith.constant 0 : i32
    return %c0_i32, %c0_i32_0 : i32, i32
  }
  func.func @transform_9(%arg0: i32) -> (i32, i32) {
    %c0_i32 = arith.constant 0 : i32
    %c0_i32_0 = arith.constant 0 : i32
    return %arg0, %c0_i32 : i32, i32
  }
}

</mosaic_0001>

<bundles_post_ra>
// kernel: sequence_ranker_forward.1
= control target key start
LH: loop header
LB: loop body
LE: loop exit
PB: predicated region body
PF: predicated region fallthrough
CT: control target
= control target key end

     0   :  { %vm70_vm0 = vcmask 261120   ;;  %v593_v8 = vmov 0   ;;  %v154_v56 = vlaneseq  ;;  %vm470_vm1 = vcmask 7168   ;;  %s738_s2 = inlined_call_operand.vmem [shape: bf16[32,32], index: 2, kind: input, shape index: {}]   ;;  %s739_s0 = inlined_call_operand.vmem [shape: bf16[16,32], index: 0, kind: input, shape index: {}]   ;;  %s740_s1 = inlined_call_operand.vmem [shape: bf16[16,32], index: 1, kind: input, shape index: {}]   ;;  %s741_s4 = inlined_call_operand.vmem [shape: bf16[32,256], index: 4, kind: input, shape index: {}]   ;;  %s742_s6 = inlined_call_operand.vmem [shape: bf16[256,128], index: 6, kind: input, shape index: {}]   ;;  %s743_s3 = inlined_call_operand.vmem [shape: f32[1,32], index: 3, kind: input, shape index: {}]   ;;  %s744_s5 = inlined_call_operand.vmem [shape: f32[1,256], index: 5, kind: input, shape index: {}]   ;;  %s745_s7 = inlined_call_operand.vmem [shape: f32[1,128], index: 7, kind: input, shape index: {}]   ;;  %s746_s8 = inlined_call_operand.vmem [shape: f32[1,128], index: 8, kind: input, shape index: {}]   ;;  %s747_s9 = inlined_call_operand.vmem [shape: f32[16,1], index: 9, kind: output, shape index: {}]  }
   0x1   :  { %v551_v0 = vld [vmem:[%s738_s2] sm:$0xff]   ;;  %v552_v1 = vld [vmem:[%s738_s2 + $0x8] sm:$0xff]   ;;  %v560_v6 = vld [vmem:[%s741_s4 + $0x14] ss:$8 sps:$4 sm:$0xff]  }
   0x2   :  { %542 = vmatprep.subr.bf16.mxu1 %v551_v0  ;;  %v553_v2 = vld [vmem:[%s739_s0] sm:$0xff]   ;;  %v558_v7 = vld [vmem:[%s741_s4 + $0x10] ss:$8 sps:$4 sm:$0xff]   ;;  %v563_v11 = vld [vmem:[%s742_s6 + $0x48] sm:$0xff]   ;;  %v155_v57 = vshrl.u32 %v154_v56, 7 }
   0x3   :  { %543 = vmatpush3.bf16.msra.mxu1 %v551_v0  ;;  %546 = vmatprep.mubr.msk.bf16.mxu1 %vm70_vm0, %v553_v2  ;;  %v554_v3 = vld [vmem:[%s740_s1] sm:$0xff]   ;;  %v564_v12 = vld [vmem:[%s742_s6 + $0x8] sm:$0xff]   ;;  %v565_v13 = vld [vmem:[%s742_s6 + $0x50] sm:$0xff]  }
   0x4   :  { %544 = vmatprep.subr.bf16.mxu1 %v552_v1  ;;  %v557_v4 = vld [vmem:[%s741_s4 + $0x4] ss:$8 sps:$4 sm:$0xff]   ;;  %v555_v5 = vld [vmem:[%s741_s4] ss:$8 sps:$4 sm:$0xff]   ;;  %v566_v14 = vld [vmem:[%s742_s6 + $0x10] sm:$0xff]   ;;  %v156_v58 = vsub.s32 0, %v155_v57 }
   0x5   :  { %v561_v9 = vld [vmem:[%s742_s6 + $0x40] sm:$0xff]   ;;  %v567_v15 = vld [vmem:[%s742_s6 + $0x58] sm:$0xff]   ;;  %v571_v19 = vld [vmem:[%s742_s6 + $0x68] sm:$0xff]   ;;  %v160_v60 = vsub.s32 1, %v155_v57 }
   0x6   :  { %v562_v10 = vld [vmem:[%s742_s6] sm:$0xff]   ;;  %514 = vmatprep.subr.bf16.mxu0 %v561_v9  ;;  %v568_v16 = vld [vmem:[%s742_s6 + $0x18] sm:$0xff]   ;;  %v572_v51 = vld [vmem:[%s742_s6 + $0x28] sm:$0xff]  }
   0x7   :  { %545 = vmatpush3.bf16.msra.mxu1 %v552_v1  ;;  %515 = vmatpush3.bf16.msra.mxu0 %v562_v10  ;;  %v569_v17 = vld [vmem:[%s742_s6 + $0x60] sm:$0xff]   ;;  %v573_v52 = vld [vmem:[%s742_s6 + $0x70] sm:$0xff]   ;;  %v575_v54 = vld [vmem:[%s742_s6 + $0x78] sm:$0xff]  }
   0x8   :  { %190 = vmatprep.subr.bf16.mxu1 %v557_v4  ;;  %516 = vmatprep.subr.bf16.mxu0 %v563_v11  ;;  %v570_v18 = vld [vmem:[%s742_s6 + $0x20] sm:$0xff]   ;;  %v574_v53 = vld [vmem:[%s742_s6 + $0x30] sm:$0xff]   ;;  %v576_v55 = vld [vmem:[%s742_s6 + $0x38] sm:$0xff]  }
   0x9   :  { %v479_v20 = vld [vmem:[%s743_s3] ss:$0 sm:$0xff] }
   0xa   :  { %547 = vmatmul.mubr.msk.bf16.vlgmr.msra.gmra.mrb[0].mxu1 %vm70_vm0, %v554_v3  ;;  %v152_v59 = vld [vmem:[%s744_s5] sm:$0x3] }
   0xb   :  { %191 = vmatpush1.bf16.msra.mxu1 %v555_v5  ;;  %222 = vmatprep.mubr.bf16.mxu1 %v593_v8  ;;  %v157_v61 = vrot.slane %v152_v59, %v156_v58  ;;  %v161_v62 = vrot.slane %v152_v59, %v160_v60 }
   0xc   :  { %192 = vmatprep.subr.bf16.mxu1 %v560_v6  ;;  %517 = vmatpush3.bf16.msra.mxu0 %v564_v12 }
   0xd   :  { %518 = vmatprep.subr.bf16.mxu0 %v565_v13 }
   0xf   :  { %193 = vmatpush1.bf16.msra.mxu1 %v558_v7 }
  0x10   :  { %519 = vmatpush3.bf16.msra.mxu0 %v566_v14 }
  0x11   :  { %520 = vmatprep.subr.bf16.mxu0 %v567_v15 }
  0x14   :  { %521 = vmatpush3.bf16.msra.mxu0 %v568_v16 }
  0x15   :  { %522 = vmatprep.subr.bf16.mxu0 %v569_v17 }
  0x18   :  { %523 = vmatpush3.bf16.msra.mxu0 %v570_v18 }
  0x19   :  { %524 = vmatprep.subr.bf16.mxu0 %v571_v19 }
  0x1c   :  { %525 = vmatpush3.bf16.msra.mxu0 %v572_v51 }
  0x1d   :  { %526 = vmatprep.subr.bf16.mxu0 %v573_v52 }
  0x20   :  { %527 = vmatpush3.bf16.msra.mxu0 %v574_v53 }
  0x21   :  { %528 = vmatprep.subr.bf16.mxu0 %v575_v54 }
  0x24   :  { %529 = vmatpush3.bf16.msra.mxu0 %v576_v55 }
  0xdd   :  { %v548_v21 = vpop.f32.mrb[0].mxu1 }
  0xde   :  { %v120_v22 = vadd.f32 %v548_v21, %v479_v20  ;;  %v111_v23 = vpop.f32.mrb[1].mxu1 }
  0xdf   :  { %v112_v24 = vadd.f32 %v479_v20, %v111_v23  ;;  %v549_v25 = vpop.f32.mrb[2].mxu1 }
  0xe0   :  { %v132_v26 = vmul.f32 0.70710677, %v120_v22  ;;  %v123_v27 = vadd.f32 %v549_v25, %v479_v20  ;;  %v114_v28 = vpop.f32.mrb[3].mxu1  ;;  %v128_v39 = vmul.f32 0.5, %v120_v22 }
  0xe1   :  { %v130_v29 = vmul.f32 0.70710677, %v112_v24  ;;  %v115_v30 = vadd.f32 %v479_v20, %v114_v28  ;;  %v126_v42 = vmul.f32 0.5, %v112_v24 }
  0xe2   :  { %577 = verf.f32 %v132_v26  ;;  %v133_v31 = vmul.f32 0.70710677, %v123_v27  ;;  %v129_v40 = vmul.f32 0.5, %v123_v27 }
  0xe3   :  { %579 = verf.f32 %v130_v29  ;;  %v131_v32 = vmul.f32 0.70710677, %v115_v30  ;;  %v127_v43 = vmul.f32 0.5, %v115_v30 }
  0xe4   :  { %581 = verf.f32 %v133_v31 }
  0xe5   :  { %583 = verf.f32 %v131_v32 }
  0xec   :  { %v578_v33 = vpop.eup %577 }
  0xed   :  { %v580_v34 = vpop.eup %579  ;;  %v140_v35 = vadd.f32 1.0, %v578_v33  ;;  %v490_v33 = vld [vmem:[%s745_s7] ss:$0 sm:$0xff] }
  0xee   :  { %v582_v36 = vpop.eup %581  ;;  %v138_v37 = vadd.f32 1.0, %v580_v34 }
  0xef   :  { %v584_v38 = vpop.eup %583  ;;  %v141_v41 = vadd.f32 1.0, %v582_v36  ;;  %v144_v45 = vmul.f32 %v140_v35, %v128_v39 }
  0xf0   :  { %v139_v44 = vadd.f32 1.0, %v584_v38  ;;  %v142_v47 = vmul.f32 %v138_v37, %v126_v42 }
  0xf1   :  { %v145_v46 = vmul.f32 %v141_v41, %v129_v40 }
  0xf2   :  { %v143_v48 = vmul.f32 %v139_v44, %v127_v43 }
  0xf3   :  { %v147_v49 = vpack.c.bf16 %v145_v46, %v144_v45  ;;  %v507_v46 = vld [vmem:[%s746_s8] ss:$0 sm:$0xff] }
  0xf4   :  { %v146_v50 = vpack.c.bf16 %v143_v48, %v142_v47 }
  0xf6   :  { %488 = vmatmul.mubr.msk.bf16.vlgmr.msra.gmra.mrb[4].mxu1 %vm70_vm0, %v146_v50 }
  0xf7   :  { %232 = vmatprep.mubr.bf16.mxu1 %v593_v8 }
  0xfe   :  { %489 = vmatmul.mubr.msk.bf16.gmra.mrb[8].mxu1 %vm70_vm0, %v147_v49 }
 0x1c9   :  { %v224_v63 = vpop.f32.mrb[4].mxu1 }
 0x1ca   :  { %v225_v0 = vadd.f32 %v224_v63, %v157_v61  ;;  %v226_v1 = vpop.f32.mrb[5].mxu1 }
 0x1cb   :  { %v227_v2 = vadd.f32 %v226_v1, %v161_v62  ;;  %v228_v3 = vpop.f32.mrb[6].mxu1 }
 0x1cc   :  { %v229_v4 = vadd.f32 %v228_v3, %v157_v61  ;;  %v230_v5 = vpop.f32.mrb[7].mxu1  ;;  %v243_v7 = vmax.f32 %v225_v0, 0.0 }
 0x1cd   :  { %v231_v6 = vadd.f32 %v230_v5, %v161_v62  ;;  %v244_v9 = vmax.f32 %v227_v2, 0.0 }
 0x1ce   :  { %v245_v8 = vmax.f32 %v229_v4, 0.0 }
 0x1cf   :  { %v246_v10 = vmax.f32 %v231_v6, 0.0 }
 0x1d0   :  { %v251_v11 = vpack.c.bf16 %v245_v8, %v243_v7 }
 0x1d1   :  { %v234_v12 = vpop.f32.mrb[8].mxu1  ;;  %v252_v13 = vpack.c.bf16 %v246_v10, %v244_v9 }
 0x1d2   :  { %v235_v14 = vadd.f32 %v234_v12, %v157_v61  ;;  %v236_v15 = vpop.f32.mrb[9].mxu1 }
 0x1d3   :  { %v237_v16 = vadd.f32 %v236_v15, %v161_v62  ;;  %v238_v17 = vpop.f32.mrb[10].mxu1  ;;  %422 = vmatprep.mubr.bf16.mxu0 %v252_v13 }
 0x1d4   :  { %v239_v18 = vadd.f32 %v238_v17, %v157_v61  ;;  %v240_v19 = vpop.f32.mrb[11].mxu1  ;;  %423 = vmatmul.mubr.bf16.vlgmr.msra.gmra.mrb[0].mxu0 %v251_v11  ;;  %v247_v21 = vmax.f32 %v235_v14, 0.0 }
 0x1d5   :  { %v241_v20 = vadd.f32 %v240_v19, %v161_v62  ;;  %v248_v23 = vmax.f32 %v237_v16, 0.0 }
 0x1d6   :  { %v249_v22 = vmax.f32 %v239_v18, 0.0 }
 0x1d7   :  { %v250_v24 = vmax.f32 %v241_v20, 0.0 }
 0x1d8   :  { %v253_v25 = vpack.c.bf16 %v249_v22, %v247_v21 }
 0x1d9   :  { %v254_v26 = vpack.c.bf16 %v250_v24, %v248_v23 }
 0x1db   :  { %430 = vmatprep.mubr.bf16.mxu0 %v254_v26 }
 0x1dc   :  { %431 = vmatmul.mubr.bf16.gmra.mrb[4].mxu0 %v253_v25 }
 0x2a7   :  { %v530_v27 = vpop.f32.mrb[0].mxu0 }
 0x2a8   :  { %v531_v28 = vpop.f32.mrb[1].mxu0 }
 0x2a9   :  { %v532_v29 = vadd.f32 %v531_v28, %v530_v27  ;;  %v533_v30 = vpop.f32.mrb[2].mxu0 }
 0x2aa   :  { %v534_v31 = vpop.f32.mrb[3].mxu0 }
 0x2ab   :  { %v535_v32 = vadd.f32 %v534_v31, %v533_v30  ;;  %v425_v36 = vadd.f32 %v532_v29, %v490_v33 }
 0x2ad   :  { %v428_v40 = vadd.f32 %v535_v32, %v490_v33  ;;  %v439_v43 = vmax.f32 %v425_v36, 0.0 }
 0x2af   :  { %v536_v34 = vpop.f32.mrb[4].mxu0  ;;  %v440_v47 = vmax.f32 %v428_v40, 0.0 }
 0x2b0   :  { %v537_v35 = vpop.f32.mrb[5].mxu0 }
 0x2b1   :  { %v538_v37 = vadd.f32 %v537_v35, %v536_v34  ;;  %v539_v38 = vpop.f32.mrb[6].mxu0 }
 0x2b2   :  { %v540_v39 = vpop.f32.mrb[7].mxu0 }
 0x2b3   :  { %v433_v41 = vadd.f32 %v538_v37, %v490_v33  ;;  %v541_v42 = vadd.f32 %v540_v39, %v539_v38 }
 0x2b5   :  { %v441_v44 = vmax.f32 %v433_v41, 0.0  ;;  %v436_v45 = vadd.f32 %v541_v42, %v490_v33 }
 0x2b7   :  { %v442_v48 = vmax.f32 %v436_v45, 0.0  ;;  %v443_v49 = vsub.f32 %v439_v43, %v441_v44 }
 0x2b9   :  { %v452_v50 = vmul.f32 %v507_v46, %v443_v49  ;;  %v444_v51 = vsub.f32 %v440_v47, %v442_v48 }
 0x2bb   :  { %454 = vadd.xlane.f32.xlu0 %v452_v50  ;;  %v453_v52 = vmul.f32 %v507_v46, %v444_v51 }
 0x2bf   :  { %456 = vadd.xlane.f32.xlu0 %v453_v52 }
 0x348   :  { %v455_v53 = vpop.xlane.xlu0 %454 }
 0x349   :  { %v508_v54 = vmul.f32 -1.442695, %v455_v53 }
 0x34b   :  { %585 = vpow2.f32 %v508_v54 }
 0x34c   :  { %v457_v55 = vpop.xlane.xlu0 %456 }
 0x34d   :  { %v509_v56 = vmul.f32 -1.442695, %v457_v55 }
 0x34f   :  { %587 = vpow2.f32 %v509_v56 }
 0x355   :  { %v586_v57 = vpop.eup %585 }
 0x356   :  { %v464_v58 = vadd.f32 1.0, %v586_v57 }
 0x358   :  { %589 = vrcp.f32 %v464_v58 }
 0x359   :  { %v588_v59 = vpop.eup %587 }
 0x35a   :  { %v465_v60 = vadd.f32 1.0, %v588_v59 }
 0x35c   :  { %591 = vrcp.f32 %v465_v60 }
 0x362   :  { %v590_v61 = vpop.eup %589 }
 0x363   :  { %471 = vst.msk [vmem:[%s747_s9] sm:$0xff] %vm470_vm1, %v590_v61 }
 0x366   :  { %v592_v62 = vpop.eup %591 }
 0x367   :  { %472 = vst.msk [vmem:[%s747_s9 + $0x8] sm:$0xff] %vm470_vm1, %v592_v62 }

</bundles_post_ra>
